<compile_context>
chip_gen: v6e
topology: v6e:2x2x1
jax: 0.10.0
libtpu: 0.0.40
codegen_flags: <defaults>
</compile_context>

<pallas_src>
import math
import jax
import jax.numpy as jnp
from jax.experimental import pallas as pl
from jax.experimental.pallas import tpu as pltpu


def _flexgconv_kernel(inp_ref, x_ref, pa_ref, w0_ref, w1_ref, b_ref, out_ref):
    # inp_ref : (TB*N, Fin)   f32   input node features (batch tile flattened into rows)
    # x_ref   : (TB*N, Fin)   f32   X node features
    # pa_ref  : (TB*N, TB*N)  bf16  kron(I_TB, P @ A)   (batch-invariant)
    # w0_ref  : (Fin, Fout)   bf16  W[0]                (batch-invariant)
    # w1_ref  : (Fin, Fout)   bf16  W[1]                (batch-invariant)
    # b_ref   : (1, Fout)     f32   bias                (batch-invariant)
    # out_ref : (TB*N, Fout)  f32   output tile
    hw1 = jnp.dot(inp_ref[...].astype(jnp.bfloat16), w0_ref[...],
                  preferred_element_type=jnp.float32)            # input @ W0
    xw = jnp.dot(x_ref[...].astype(jnp.bfloat16), w1_ref[...],
                 preferred_element_type=jnp.float32)             # X @ W1
    # One block-diagonal GEMM applies P@A to every batch element in the tile.
    first = jnp.dot(pa_ref[...], hw1.astype(jnp.bfloat16),
                    preferred_element_type=jnp.float32)
    out_ref[...] = (first + xw + b_ref[...]).astype(out_ref.dtype)


def _pick_batch_tile(B, N, max_rows=256):
    """Largest divisor TB of B with TB*N inside one fat MXU tile, preferring a
    grid of >=2 steps (v7x megacore + DMA/compute overlap)."""
    divisors = [d for d in range(1, B + 1) if B % d == 0]
    pref = [d for d in divisors if d * N <= max_rows and B // d >= 2]
    fits = [d for d in divisors if d * N <= max_rows]
    tb = max(pref) if pref else (max(fits) if fits else 1)
    # (8,128) rule: second-minor block dim must be a multiple of 8 unless the
    # block spans the whole flattened batch*node axis.
    if (tb * N) % 8 != 0:
        tb = B
    return tb


def flex_gconv(inp, X, adj, Q, W, bias, beta=0.2, block_b=None):
    """inp, X: (B, N, Fin); adj, Q: (N, N); W: (2, Fin, Fout); bias: (Fout,)"""
    B, N, Fin = inp.shape
    Fout = W.shape[2]

    TB = _pick_batch_tile(B, N) if block_b is None else block_b
    assert B % TB == 0, "batch tile must divide batch"
    assert (TB * N) % 8 == 0 or TB == B, "batch tile rows must be sublane-aligned"

    # ---- batch-invariant graph propagation matrix, hoisted out of the kernel ----
    A = beta * adj + beta * Q
    A = (A + A.T) * 0.5
    I = jnp.eye(N, dtype=jnp.float32)
    PA = jnp.matmul((1.0 - beta) * I + beta * A, A)              # (N, N) f32
    # Block-diagonal replication over the batch tile -> single MXU pass per step.
    PA_bd = jnp.kron(jnp.eye(TB, dtype=jnp.float32), PA).astype(jnp.bfloat16)

    W0 = W[0].astype(jnp.bfloat16)                               # (Fin, Fout)
    W1 = W[1].astype(jnp.bfloat16)                               # (Fin, Fout)
    bias2d = bias.reshape(1, Fout).astype(jnp.float32)

    # Free contiguous reshapes — no concat / cast HBM round trip in the wrapper.
    inp_flat = inp.reshape(B * N, Fin)
    x_flat = X.reshape(B * N, Fin)

    rows = TB * N
    grid = (B // TB,)

    cost = pl.CostEstimate(
        flops=int(2 * B * N * Fout * (2 * Fin + N)),
        transcendentals=0,
        bytes_accessed=int(4 * 2 * B * N * Fin          # inp + X (f32)
                           + 2 * rows * rows            # kron(I, PA) (bf16)
                           + 2 * 2 * Fin * Fout         # W0, W1 (bf16)
                           + 4 * Fout                   # bias (f32)
                           + 4 * B * N * Fout),         # output (f32)
    )

    out_flat = pl.pallas_call(
        _flexgconv_kernel,
        out_shape=jax.ShapeDtypeStruct((B * N, Fout), jnp.float32),
        grid_spec=pl.GridSpec(
            grid=grid,
            in_specs=[
                pl.BlockSpec((rows, Fin), lambda i: (i, 0)),   # input (per batch tile)
                pl.BlockSpec((rows, Fin), lambda i: (i, 0)),   # X     (per batch tile)
                pl.BlockSpec((rows, rows), lambda i: (0, 0)),  # kron(I, PA)  (invariant)
                pl.BlockSpec((Fin, Fout), lambda i: (0, 0)),   # W0           (invariant)
                pl.BlockSpec((Fin, Fout), lambda i: (0, 0)),   # W1           (invariant)
                pl.BlockSpec((1, Fout), lambda i: (0, 0)),     # bias         (invariant)
            ],
            out_specs=pl.BlockSpec((rows, Fout), lambda i: (i, 0)),
        ),
        compiler_params=pltpu.CompilerParams(
            dimension_semantics=("parallel",),
        ),
        cost_estimate=cost,
    )(inp_flat, x_flat, PA_bd, W0, W1, bias2d)

    # Free contiguous reshape back to (B, N, Fout) — no slice, no extra copy.
    return out_flat.reshape(B, N, Fout)


def flex_gconv_reference(inp, X, adj, Q, W, bias, beta=0.2):
    """Pure-JAX f32 reference mirroring the PyTorch forward exactly."""
    hw1 = jnp.matmul(inp, W[0])
    A = beta * adj + beta * Q
    A = (A + A.T) / 2.0
    I = jnp.eye(A.shape[0], dtype=jnp.float32)
    first = jnp.matmul(jnp.matmul((1.0 - beta) * I + beta * A, A), hw1)
    XW = jnp.matmul(X, W[1])
    return first + XW + bias.reshape(1, 1, -1)


def flex_gconv_reference_bf16(inp, X, adj, Q, W, bias, beta=0.2):
    """Same math, but matmul operands rounded to bf16 with f32 accumulation,
    mirroring the kernel's MXU usage (tight numerical check)."""
    bf16 = jnp.bfloat16
    A = beta * adj + beta * Q
    A = (A + A.T) / 2.0
    I = jnp.eye(A.shape[0], dtype=jnp.float32)
    PA = jnp.matmul((1.0 - beta) * I + beta * A, A)
    hw1 = jnp.matmul(inp.astype(bf16), W[0].astype(bf16),
                     preferred_element_type=jnp.float32)
    first = jnp.matmul(PA.astype(bf16), hw1.astype(bf16),
                       preferred_element_type=jnp.float32)
    XW = jnp.matmul(X.astype(bf16), W[1].astype(bf16),
                    preferred_element_type=jnp.float32)
    return first + XW + bias.reshape(1, 1, -1)


def xavier_uniform(key, shape, gain=1.414):
    fan_in, fan_out = shape[-2], shape[-1]
    bound = gain * math.sqrt(6.0 / (fan_in + fan_out))
    return jax.random.uniform(key, shape, jnp.float32, -bound, bound)


if __name__ == "__main__":
    # Small, deterministic synthetic setup consistent with the module.
    B, N, Fin, Fout = 2, 16, 8, 16
    beta = 0.2

    key = jax.random.PRNGKey(0)
    k_adj, k_w, k_b, k_x, k_X = jax.random.split(key, 5)

    adj = jax.random.uniform(k_adj, (N, N), jnp.float32)
    W = xavier_uniform(k_w, (2, Fin, Fout), gain=1.414)          # (2, Fin, Fout)
    Q = jnp.full((N, N), 1e-06, dtype=jnp.float32)               # nn.init.constant_(Q, 1e-6)
    stdv = 1.0 / math.sqrt(Fout)
    bias = jax.random.uniform(k_b, (Fout,), jnp.float32, -stdv, stdv)
    # The module's M parameter (and HW2) never reach the output; omitted.

    inp = jax.random.normal(k_x, (B, N, Fin), jnp.float32)
    Xf = jax.random.normal(k_X, (B, N, Fin), jnp.float32)

    out = jax.block_until_ready(flex_gconv(inp, Xf, adj, Q, W, bias, beta))

    ref_f32 = flex_gconv_reference(inp, Xf, adj, Q, W, bias, beta)
    ref_bf16 = flex_gconv_reference_bf16(inp, Xf, adj, Q, W, bias, beta)

    assert out.shape == (B, N, Fout)
    # Tight check vs. a reference using the same bf16-operand / f32-accumulate math.
    assert jnp.allclose(out, ref_bf16, atol=1e-2, rtol=1e-2), "mismatch vs bf16-matched reference"
    # Looser sanity check vs. the full-f32 PyTorch-equivalent math; the gap is
    # bounded by bf16 operand rounding on the MXU.
    assert jnp.allclose(out, ref_f32, atol=1e-1, rtol=5e-2), "mismatch vs f32 reference"

    print("KERNEL_OK")
</pallas_src>

<mosaic_0001>
module attributes {stable_mosaic.version = 11 : i64} {
  func.func @_flexgconv_kernel(%arg0: i32, %arg1: memref<16x8xf32, #tpu.memory_space<vmem>>, %arg2: memref<16x8xf32, #tpu.memory_space<vmem>>, %arg3: memref<16x16xbf16, #tpu.memory_space<vmem>>, %arg4: memref<8x16xbf16, #tpu.memory_space<vmem>>, %arg5: memref<8x16xbf16, #tpu.memory_space<vmem>>, %arg6: memref<1x16xf32, #tpu.memory_space<vmem>>, %arg7: memref<16x16xf32, #tpu.memory_space<vmem>>) attributes {dimension_semantics = [#tpu.dimension_semantics<parallel>], iteration_bounds = array<i64: 2>, scalar_prefetch = 0 : i64, scratch_operands = 0 : i64, tpu.core_type = #tpu.core_type<tc>, window_params = [{transform_indices = @transform_0, window_bounds = array<i64: 16, 8>}, {transform_indices = @transform_1, window_bounds = array<i64: 16, 8>}, {pipeline_mode = #tpu.pipeline_mode<synchronous>, transform_indices = @transform_2, window_bounds = array<i64: 16, 16>}, {pipeline_mode = #tpu.pipeline_mode<synchronous>, transform_indices = @transform_3, window_bounds = array<i64: 8, 16>}, {pipeline_mode = #tpu.pipeline_mode<synchronous>, transform_indices = @transform_4, window_bounds = array<i64: 8, 16>}, {pipeline_mode = #tpu.pipeline_mode<synchronous>, transform_indices = @transform_5, window_bounds = array<i64: 1, 16>}, {transform_indices = @transform_6, window_bounds = array<i64: 16, 16>}]} {
    %c0 = arith.constant 0 : index
    %c0_0 = arith.constant 0 : index
    %0 = vector.load %arg1[%c0, %c0_0] : memref<16x8xf32, #tpu.memory_space<vmem>>, vector<16x8xf32>
    %1 = arith.truncf %0 : vector<16x8xf32> to vector<16x8xbf16>
    %c0_1 = arith.constant 0 : index
    %c0_2 = arith.constant 0 : index
    %2 = vector.load %arg4[%c0_1, %c0_2] : memref<8x16xbf16, #tpu.memory_space<vmem>>, vector<8x16xbf16>
    %cst = arith.constant dense<0.000000e+00> : vector<16x16xf32>
    %3 = tpu.matmul %1, %2, %cst {dimension_numbers = #tpu.dot_dimension_numbers<[1], [0], [0], [1], [0, 0, 1, 1], [], []>} : vector<16x8xbf16>, vector<8x16xbf16>, vector<16x16xf32> -> vector<16x16xf32>
    %c0_3 = arith.constant 0 : index
    %c0_4 = arith.constant 0 : index
    %4 = vector.load %arg2[%c0_3, %c0_4] : memref<16x8xf32, #tpu.memory_space<vmem>>, vector<16x8xf32>
    %5 = arith.truncf %4 : vector<16x8xf32> to vector<16x8xbf16>
    %c0_5 = arith.constant 0 : index
    %c0_6 = arith.constant 0 : index
    %6 = vector.load %arg5[%c0_5, %c0_6] : memref<8x16xbf16, #tpu.memory_space<vmem>>, vector<8x16xbf16>
    %cst_7 = arith.constant dense<0.000000e+00> : vector<16x16xf32>
    %7 = tpu.matmul %5, %6, %cst_7 {dimension_numbers = #tpu.dot_dimension_numbers<[1], [0], [0], [1], [0, 0, 1, 1], [], []>} : vector<16x8xbf16>, vector<8x16xbf16>, vector<16x16xf32> -> vector<16x16xf32>
    %c0_8 = arith.constant 0 : index
    %c0_9 = arith.constant 0 : index
    %8 = vector.load %arg3[%c0_8, %c0_9] : memref<16x16xbf16, #tpu.memory_space<vmem>>, vector<16x16xbf16>
    %9 = arith.truncf %3 : vector<16x16xf32> to vector<16x16xbf16>
    %cst_10 = arith.constant dense<0.000000e+00> : vector<16x16xf32>
    %10 = tpu.matmul %8, %9, %cst_10 {dimension_numbers = #tpu.dot_dimension_numbers<[1], [0], [0], [1], [0, 0, 1, 1], [], []>} : vector<16x16xbf16>, vector<16x16xbf16>, vector<16x16xf32> -> vector<16x16xf32>
    %11 = arith.addf %10, %7 : vector<16x16xf32>
    %c0_11 = arith.constant 0 : index
    %c0_12 = arith.constant 0 : index
    %12 = vector.load %arg6[%c0_11, %c0_12] : memref<1x16xf32, #tpu.memory_space<vmem>>, vector<1x16xf32>
    %13 = vector.broadcast %12 : vector<1x16xf32> to vector<16x16xf32>
    %14 = arith.addf %11, %13 : vector<16x16xf32>
    %c0_13 = arith.constant 0 : index
    %c0_14 = arith.constant 0 : index
    %15 = vector.load %arg7[%c0_13, %c0_14] : memref<16x16xf32, #tpu.memory_space<vmem>>, vector<16x16xf32>
    tpu.vector_store %arg7[%c0_13, %c0_14], %14 {strides = array<i32>} : memref<16x16xf32, #tpu.memory_space<vmem>>, vector<16x16xf32>,
    return
  }
  func.func @transform_0(%arg0: i32) -> (i32, i32) {
    %c0_i32 = arith.constant 0 : i32
    %c0_i32_0 = arith.constant 0 : i32
    return %arg0, %c0_i32 : i32, i32
  }
  func.func @transform_1(%arg0: i32) -> (i32, i32) {
    %c0_i32 = arith.constant 0 : i32
    %c0_i32_0 = arith.constant 0 : i32
    return %arg0, %c0_i32 : i32, i32
  }
  func.func @transform_2(%arg0: i32) -> (i32, i32) {
    %c0_i32 = arith.constant 0 : i32
    %c0_i32_0 = arith.constant 0 : i32
    %c0_i32_1 = arith.constant 0 : i32
    return %c0_i32, %c0_i32_0 : i32, i32
  }
  func.func @transform_3(%arg0: i32) -> (i32, i32) {
    %c0_i32 = arith.constant 0 : i32
    %c0_i32_0 = arith.constant 0 : i32
    %c0_i32_1 = arith.constant 0 : i32
    return %c0_i32, %c0_i32_0 : i32, i32
  }
  func.func @transform_4(%arg0: i32) -> (i32, i32) {
    %c0_i32 = arith.constant 0 : i32
    %c0_i32_0 = arith.constant 0 : i32
    %c0_i32_1 = arith.constant 0 : i32
    return %c0_i32, %c0_i32_0 : i32, i32
  }
  func.func @transform_5(%arg0: i32) -> (i32, i32) {
    %c0_i32 = arith.constant 0 : i32
    %c0_i32_0 = arith.constant 0 : i32
    %c0_i32_1 = arith.constant 0 : i32
    return %c0_i32, %c0_i32_0 : i32, i32
  }
  func.func @transform_6(%arg0: i32) -> (i32, i32) {
    %c0_i32 = arith.constant 0 : i32
    %c0_i32_0 = arith.constant 0 : i32
    return %arg0, %c0_i32 : i32, i32
  }
}

</mosaic_0001>

<bundles_post_ra>
// kernel: tpu_custom_call.1
= control target key start
LH: loop header
LB: loop body
LE: loop exit
PB: predicated region body
PF: predicated region fallthrough
CT: control target
= control target key end

     0   :  { %s612_s21 = smov 0   ;;  %s654_s0 = inlined_call_operand.vmem [shape: f32[32,8], index: 0, kind: input, shape index: {}]   ;;  %s655_s1 = inlined_call_operand.vmem [shape: f32[32,8], index: 1, kind: input, shape index: {}]   ;;  %s656_s2 = inlined_call_operand.vmem [shape: bf16[16,16], index: 2, kind: input, shape index: {}]   ;;  %s657_s3 = inlined_call_operand.vmem [shape: bf16[8,16], index: 3, kind: input, shape index: {}]   ;;  %s658_s4 = inlined_call_operand.vmem [shape: bf16[8,16], index: 4, kind: input, shape index: {}]   ;;  %s659_s5 = inlined_call_operand.vmem [shape: f32[1,16], index: 5, kind: input, shape index: {}]   ;;  %s660_s6 = inlined_call_operand.vmem [shape: f32[32,16], index: 6, kind: output, shape index: {}]  }
   0x1 LB: > { %s514_s22 = sadd.s32 4294967295, %s573_s21   ;;  %p518_p0 = scmp.ge.s32.totalorder %s573_s21, 1  ;;  %s573_s21 = sphi %s612_s21, %s16_s21  }
   0x2   : > { %p224_p1 = scmp.lt.s32.totalorder %s573_s21, 3 }
   0x4   : > { %p225_p2 = pnand %p518_p0, %p224_p1 }
   0x5   : > { %s519_s25 = sshll.u32 (!%p225_p2), %s514_s22, 1 }
   0x6   : > { %228 = sbr.rel (%p225_p2) target bundleno = 421 (0x1a5), region = 44  ;;  %p260_p3 = scmp.lt.s32.totalorder (!%p225_p2), %s519_s25, 3 }
   0xb   : > { %v281_v0 = vld [vmem:[%s657_s3] sm:$0xf]  ;;  %vm286_vm0 = vcmask 1043456   ;;  %v575_v1 = vmov 0.0   ;;  %vm576_vm1 = vmmov 0   ;;  %s662_s25 = smov (!%p260_p3, %s519_s25), 3 }
   0xc   : > { %538 = vmatprep.subr.bf16.mxu0 %v575_v1  ;;  %v288_v2 = vsel %vm286_vm0, %v281_v0, 0  ;;  %540 = vmatprep.mubr.msk.bf16.mxu0 %vm576_vm1, %v575_v1  ;;  %s624_s26 = sshll.u32 %s662_s25, 3  ;;  %vm282_vm2 = vcmask 64512   ;;  %v334_v6 = vld [vmem:[%s658_s4] sm:$0xf]  ;;  %vm390_vm3 = vcmask 130048  }
   0xd   : > { %539 = vmatpush3.bf16.msra.mxu0 %v288_v2  ;;  %544 = vmatprep.subr.bf16.mxu1 %v575_v1  ;;  %s263_s29 = scalar_lea.vmem %s654_s0, %s624_s26  ;;  %v339_v7 = vsel %vm286_vm0, %v334_v6, 0  ;;  %s269_s10 = scalar_lea.vmem %s655_s1, %s624_s26  ;;  %v566_v16 = vld [vmem:[%s656_s2] sm:$0xff]  }
   0xe   : > { %550 = vmatprep.subr.bf16.mxu0 %v575_v1  ;;  %546 = vmatprep.mubr.msk.bf16.mxu1 %vm576_vm1, %v575_v1  ;;  %v278_v3 = vld [vmem:[%s263_s29] sm:$0xff]  ;;  %v279_v4 = vld [vmem:[%s263_s29 + $0x8] sm:$0xff]  ;;  %s275_s17 = scalar_lea.vmem %s660_s6, %s624_s26 }
   0xf   : > { %v280_v5 = vpack.c.bf16 %v279_v4, %v278_v3  ;;  %545 = vmatpush3.bf16.msra.mxu1 %v339_v7  ;;  %v331_v8 = vld [vmem:[%s269_s10] sm:$0xff]  ;;  %v332_v9 = vld [vmem:[%s269_s10 + $0x8] sm:$0xff] }
  0x10   : > { %v333_v10 = vpack.c.bf16 %v332_v9, %v331_v8  ;;  %v529_v22 = vld [vmem:[%s659_s5] ss:$0 sm:$0xff] }
  0x11   : > { %541 = vmatmul.mubr.msk.bf16.vlgmr.msra.gmra.mxu0 %vm282_vm2, %v280_v5 }
  0x12   : > { %552 = vmatprep.mubr.msk.bf16.mxu0 %vm576_vm1, %v575_v1  ;;  %547 = vmatmul.mubr.msk.bf16.vlgmr.msra.gmra.mxu1 %vm282_vm2, %v333_v10 }
  0xd1   : > { %v324_v11 = vpop.f32.mrf.mxu0 }
  0xd2   : > { %v375_v17 = vpop.f32.mrf.mxu1 }
  0xd3   : > { %v542_v12 = vpop.f32.mrf.mxu0 }
  0xd4   : > { %v548_v18 = vpop.f32.mrf.mxu1 }
  0xd5   : > { %v327_v13 = vpop.f32.mrf.mxu0 }
  0xd6   : > { %v384_v14 = vpack.c.bf16 %v327_v13, %v324_v11  ;;  %v378_v19 = vpop.f32.mrf.mxu1 }
  0xd7   : > { %v543_v15 = vpop.f32.mrf.mxu0 }
  0xd8   : > { %551 = vmatpush3.bf16.msra.mxu0 %v384_v14  ;;  %v549_v20 = vpop.f32.mrf.mxu1 }
  0xdb   : > { %553 = vmatmul.mubr.msk.bf16.vlgmr.msra.gmra.mxu0 %vm390_vm3, %v566_v16 }
 0x19b   : > { %v428_v21 = vpop.f32.mrf.mxu0 }
 0x19c   : > { %v429_v23 = vadd.f32 %v428_v21, %v375_v17 }
 0x19d   : > { %v554_v24 = vpop.f32.mrf.mxu0 }
 0x19e   : > { %v442_v25 = vadd.f32 %v529_v22, %v429_v23 }
 0x19f   : > { %v431_v26 = vpop.f32.mrf.mxu0 }
 0x1a0   : > { %444 = vst.msk [vmem:[%s275_s17] sm:$0xff] %vm390_vm3, %v442_v25  ;;  %v432_v27 = vadd.f32 %v431_v26, %v378_v19 }
 0x1a1   : > { %v555_v28 = vpop.f32.mrf.mxu0 }
 0x1a2   : > { %v443_v29 = vadd.f32 %v529_v22, %v432_v27 }
 0x1a4   : > { %445 = vst.msk [vmem:[%s275_s17 + $0x8] sm:$0xff] %vm390_vm3, %v443_v29 }
 0x1a5 PF: > { %s16_s21 = sadd.s32 1, %s573_s21  }
 0x1a6   : > { %p13_p4 = scmp.ge.s32.totalorder %s16_s21, 4  }
 0x1a8   :  { %15 = sbr.rel (!%p13_p4) target bundleno = 1 (0x1), region = 77 }

</bundles_post_ra>
